<compile_context>
chip_gen: v7x
topology: tpu7x:2x2x1
jax: 0.10.0
libtpu: 0.0.40
codegen_flags: <defaults>
</compile_context>

<pallas_src>
import functools
import math

import jax
import jax.numpy as jnp
from jax.experimental import pallas as pl
from jax.experimental.pallas import tpu as pltpu


_NEG_BIG = -1e30                      # padded-class bias: exp() underflows to 0, no NaNs
_VMEM_LIMIT = 32 * 1024 * 1024        # explicit scoped-VMEM limit (safe on v5e/v6e/v7x)
_VMEM_BUDGET = 22 * 1024 * 1024       # working-set target, leaves ~10 MiB headroom


def _round_up(x, m):
    return ((x + m - 1) // m) * m


def _pick_tiles(N, D, C_pad, c_out):
    """Choose (tile_n, tile_k) so the double-buffered working set fits VMEM.

    Accounting (per perf feedback): every streamed block counted 2-deep, the
    (tile_n, 1) int32 label block and the (tile_n, C) logits block counted at
    their lane-padded VMEM footprint, plus the f32 accumulator scratch.
    """
    def footprint(tn, tk):
        return (2 * tn * tk * 4            # f32 x tile
                + 2 * tk * C_pad * 2       # bf16 W^T tile
                + 2 * 8 * 128 * 4          # f32 bias tile
                + 2 * tn * 128 * 4         # int32 labels, lane-padded
                + 2 * tn * c_out * 4       # f32 logits out tile, lane-padded
                + tn * C_pad * 4)          # f32 accumulator scratch

    tn_cap = max(8, _round_up(min(N, 1024), 8))   # 1024 rows ~ HBM roofline knee
    # Preferred: no K split (W^T block index is constant -> fetched once).
    for tn in (1024, 512, 256):
        tn = min(tn, tn_cap)
        if footprint(tn, D) <= _VMEM_BUDGET:
            return tn, D
    # Fallback for large D: K-tile the feature dim (accumulator + pl.when finalize).
    for tn in (1024, 512, 256, 128, 64, 32, 16, 8):
        tn = min(tn, tn_cap)
        for tk in (4096, 2048, 1024, 512, 256, 128):
            if tk < D and footprint(tn, tk) <= _VMEM_BUDGET:
                return tn, tk
    # TODO(synk): add a class (C) grid axis for num_class so large that even the
    # minimal (8, 128) working set overflows the VMEM budget.
    raise ValueError("LogisticRegression kernel: no tile configuration fits the "
                     f"VMEM budget for D={D}, C_pad={C_pad}.")


def _logreg_kernel(x_ref, wt_ref, b_ref, y_ref, logits_ref, loss_ref, acc_ref, *,
                   tile_n, tile_k, num_class, n_valid, d_valid, d_ragged):
    """Per-(batch-tile, K-tile) body.

    x_ref:(TN,TK) f32  wt_ref:(TK,Cp) bf16  b_ref:(1,Cp) f32  y_ref:(TN,1) i32
    logits_ref:(TN,C) f32  loss_ref:(1,1) f32 in SMEM  acc_ref:(TN,Cp) f32
    """
    i = pl.program_id(0)
    k = pl.program_id(1)

    @pl.when(k == 0)
    def _init():
        acc_ref[...] = jnp.broadcast_to(b_ref[...], acc_ref.shape)

    x = x_ref[...]
    w = wt_ref[...]
    if d_ragged:  # last K tile reads past D: zero BOTH operands (avoids 0 * NaN).
        k0 = k * tile_k
        col = k0 + jax.lax.broadcasted_iota(jnp.int32, x.shape, 1)
        x = jnp.where(col < d_valid, x, 0.0)
        row_k = k0 + jax.lax.broadcasted_iota(jnp.int32, w.shape, 0)
        w = jnp.where(row_k < d_valid, w, jnp.zeros_like(w))

    # MXU matmul: bf16 inputs (cast in-register), f32 accumulation.
    acc_ref[...] += jnp.dot(x.astype(jnp.bfloat16), w,
                            preferred_element_type=jnp.float32)

    @pl.when(k == pl.num_programs(1) - 1)
    def _finalize():
        logits = acc_ref[...]                               # (TN, Cp) f32
        logits_ref[...] = logits[:, :num_class]             # un-padded writeback

        # Cross entropy without materializing log-softmax:
        #   loss_row = logsumexp(logits) - logits[target]
        # Padded classes carry a -1e30 bias, so max / exp-sum are unaffected.
        m = jnp.max(logits, axis=-1, keepdims=True)
        z = logits - m
        lse = jnp.log(jnp.sum(jnp.exp(z), axis=-1, keepdims=True))      # (TN, 1)
        classes = jax.lax.broadcasted_iota(jnp.int32, z.shape, 1)
        target_z = jnp.sum(jnp.where(classes == y_ref[...], z, 0.0),
                           axis=-1, keepdims=True)                      # (TN, 1)
        per_row = lse - target_z

        # Ragged last batch tile: jnp.where (not multiply), so garbage rows with
        # NaN/Inf logits cannot leak into the partial sum.
        row = i * tile_n + jax.lax.broadcasted_iota(jnp.int32, per_row.shape, 0)
        per_row = jnp.where(row < n_valid, per_row, 0.0)
        loss_ref[0, 0] = jnp.sum(per_row)                   # (1,1) SMEM scalar


def prepare_logreg_params(w, b):
    """One-time prep (hoist out of the training step): transpose W to (D, C_pad),
    pad classes to a lane-dense multiple of 128 (zero weights, -1e30 bias), bf16."""
    C, D = w.shape
    C_pad = max(128, _round_up(C, 128))
    wt = jnp.zeros((D, C_pad), jnp.bfloat16)
    wt = wt.at[:, :C].set(jnp.transpose(w).astype(jnp.bfloat16))
    b_pad = jnp.full((1, C_pad), _NEG_BIG, jnp.float32)
    b_pad = b_pad.at[0, :C].set(b.astype(jnp.float32))
    return wt, b_pad


def logistic_regression_forward(x, y, wt, b_pad, num_class, *, tile_n=None, tile_k=None):
    """x: (N, D) f32, y: (N,) int, (wt, b_pad) from prepare_logreg_params.
    Returns (logits (N, num_class) f32, mean cross-entropy loss)."""
    N, D = x.shape
    C_pad = wt.shape[1]
    c_out = _round_up(num_class, 128)

    if tile_n is None or tile_k is None:
        tn, tk = _pick_tiles(N, D, C_pad, c_out)
        tile_n = tile_n or tn
        tile_k = tile_k or tk

    grid_n = pl.cdiv(N, tile_n)
    grid_k = pl.cdiv(D, tile_k)
    d_ragged = (D % tile_k) != 0

    y2 = y.reshape(N, 1).astype(jnp.int32)   # tiny (N int32), negligible traffic

    kernel = functools.partial(
        _logreg_kernel, tile_n=tile_n, tile_k=tile_k, num_class=num_class,
        n_valid=N, d_valid=D, d_ragged=d_ragged)

    logits, loss_parts = pl.pallas_call(
        kernel,
        grid=(grid_n, grid_k),
        in_specs=[
            pl.BlockSpec((tile_n, tile_k), lambda i, k: (i, k)),     # x (streamed f32)
            pl.BlockSpec((tile_k, C_pad), lambda i, k: (k, 0)),      # W^T (bf16)
            pl.BlockSpec((1, C_pad), lambda i, k: (0, 0)),           # bias
            pl.BlockSpec((tile_n, 1), lambda i, k: (i, 0)),          # labels
        ],
        out_specs=(
            pl.BlockSpec((tile_n, num_class), lambda i, k: (i, 0)),  # logits, un-padded
            pl.BlockSpec((1, 1), lambda i, k: (i, 0),
                         memory_space=pltpu.MemorySpace.SMEM),       # loss partial
        ),
        out_shape=(
            jax.ShapeDtypeStruct((N, num_class), jnp.float32),
            jax.ShapeDtypeStruct((grid_n, 1), jnp.float32),
        ),
        scratch_shapes=[pltpu.VMEM((tile_n, C_pad), jnp.float32)],   # logits accumulator
        compiler_params=pltpu.CompilerParams(
            # TODO(synk): on v7x, pltpu.CORE_PARALLEL on the batch axis can shard
            # the two TensorCores; kept "parallel" here for portability.
            dimension_semantics=("parallel", "arbitrary"),
            vmem_limit_bytes=_VMEM_LIMIT,
        ),
    )(x, wt, b_pad, y2)

    loss = jnp.sum(loss_parts) / jnp.float32(N)
    return logits, loss


def init_params(key, num_dim, num_class):
    # Matches torch: xavier_uniform_ on weight (shape [num_class, num_dim]), bias = 0.
    bound = math.sqrt(6.0 / (num_dim + num_class))
    w = jax.random.uniform(key, (num_class, num_dim), jnp.float32, -bound, bound)
    b = jnp.zeros((num_class,), jnp.float32)
    return w, b


if __name__ == "__main__":
    key = jax.random.PRNGKey(0)
    k_x, k_w, k_y = jax.random.split(key, 3)

    N, num_dim, num_class = 8, 32, 8
    x = jax.random.normal(k_x, (N, num_dim), jnp.float32)
    y = jax.random.randint(k_y, (N,), 0, num_class, jnp.int32)
    w, b = init_params(k_w, num_dim, num_class)

    wt, b_pad = prepare_logreg_params(w, b)       # one-time, outside the step
    logits, loss = logistic_regression_forward(x, y, wt, b_pad, num_class)
    jax.block_until_ready((logits, loss))

    # Reference with the same bf16-matmul / f32-accumulate numerics as the kernel.
    ref_logits = jnp.dot(x.astype(jnp.bfloat16), wt[:, :num_class],
                         preferred_element_type=jnp.float32) + b
    ref_logp = jax.nn.log_softmax(ref_logits, axis=-1)
    ref_loss = -jnp.mean(ref_logp[jnp.arange(N), y])
    assert logits.shape == (N, num_class) and logits.dtype == jnp.float32
    assert jnp.allclose(logits, ref_logits, atol=2e-3, rtol=2e-3), "logits mismatch"
    assert jnp.allclose(loss, ref_loss, atol=2e-3, rtol=2e-3), "loss mismatch"

    # Looser check vs pure-f32 math (torch-equivalent); slack covers bf16 matmul error.
    f32_logits = x @ w.T + b
    f32_loss = -jnp.mean(jax.nn.log_softmax(f32_logits, -1)[jnp.arange(N), y])
    assert jnp.allclose(logits, f32_logits, atol=5e-2, rtol=5e-2)
    assert jnp.allclose(loss, f32_loss, atol=5e-2, rtol=5e-2)

    print("KERNEL_OK")
</pallas_src>

<mosaic_0001>
module attributes {stable_mosaic.version = 11 : i64} {
  func.func @_logreg_kernel(%arg0: i32, %arg1: i32, %arg2: memref<8x32xf32, #tpu.memory_space<vmem>>, %arg3: memref<32x128xbf16, #tpu.memory_space<vmem>>, %arg4: memref<1x128xf32, #tpu.memory_space<vmem>>, %arg5: memref<8x1xi32, #tpu.memory_space<vmem>>, %arg6: memref<8x8xf32, #tpu.memory_space<vmem>>, %arg7: memref<1x1xf32, #tpu.memory_space<smem>>, %arg8: memref<8x128xf32, #tpu.memory_space<vmem>>) attributes {dimension_semantics = [#tpu.dimension_semantics<parallel>, #tpu.dimension_semantics<arbitrary>], iteration_bounds = array<i64: 1, 1>, scalar_prefetch = 0 : i64, scratch_operands = 1 : i64, tpu.core_type = #tpu.core_type<tc>, window_params = [{transform_indices = @transform_0, window_bounds = array<i64: 8, 32>}, {transform_indices = @transform_1, window_bounds = array<i64: 32, 128>}, {pipeline_mode = #tpu.pipeline_mode<synchronous>, transform_indices = @transform_2, window_bounds = array<i64: 1, 128>}, {transform_indices = @transform_3, window_bounds = array<i64: 8, 1>}, {transform_indices = @transform_4, window_bounds = array<i64: 8, 8>}, {transform_indices = @transform_5, window_bounds = array<i64: 1, 1>}]} {
    %c0_i32 = arith.constant 0 : i32
    %0 = arith.cmpi eq, %arg1, %c0_i32 : i32
    %1 = arith.extui %0 : i1 to i32
    %c0_i32_0 = arith.constant 0 : i32
    %2 = arith.cmpi ne, %1, %c0_i32_0 : i32
    scf.if %2 {
      %c0_10 = arith.constant 0 : index
      %c0_11 = arith.constant 0 : index
      %13 = vector.load %arg4[%c0_10, %c0_11] : memref<1x128xf32, #tpu.memory_space<vmem>>, vector<1x128xf32>
      %14 = vector.shape_cast %13 : vector<1x128xf32> to vector<1x128xf32>
      %15 = vector.broadcast %14 : vector<1x128xf32> to vector<8x128xf32>
      %c0_12 = arith.constant 0 : index
      %c0_13 = arith.constant 0 : index
      %16 = vector.load %arg8[%c0_12, %c0_13] : memref<8x128xf32, #tpu.memory_space<vmem>>, vector<8x128xf32>
      tpu.vector_store %arg8[%c0_12, %c0_13], %15 {strides = array<i32>} : memref<8x128xf32, #tpu.memory_space<vmem>>, vector<8x128xf32>,
    } else {
    }
    %c0 = arith.constant 0 : index
    %c0_1 = arith.constant 0 : index
    %3 = vector.load %arg2[%c0, %c0_1] : memref<8x32xf32, #tpu.memory_space<vmem>>, vector<8x32xf32>
    %c0_2 = arith.constant 0 : index
    %c0_3 = arith.constant 0 : index
    %4 = vector.load %arg3[%c0_2, %c0_3] : memref<32x128xbf16, #tpu.memory_space<vmem>>, vector<32x128xbf16>
    %c0_4 = arith.constant 0 : index
    %c0_5 = arith.constant 0 : index
    %5 = vector.load %arg8[%c0_4, %c0_5] : memref<8x128xf32, #tpu.memory_space<vmem>>, vector<8x128xf32>
    %6 = arith.truncf %3 : vector<8x32xf32> to vector<8x32xbf16>
    %cst = arith.constant dense<0.000000e+00> : vector<8x128xf32>
    %7 = tpu.matmul %6, %4, %cst {dimension_numbers = #tpu.dot_dimension_numbers<[1], [0], [0], [1], [0, 0, 1, 1], [], []>} : vector<8x32xbf16>, vector<32x128xbf16>, vector<8x128xf32> -> vector<8x128xf32>
    %8 = arith.addf %5, %7 : vector<8x128xf32>
    %c0_6 = arith.constant 0 : index
    %c0_7 = arith.constant 0 : index
    %9 = vector.load %arg8[%c0_6, %c0_7] : memref<8x128xf32, #tpu.memory_space<vmem>>, vector<8x128xf32>
    tpu.vector_store %arg8[%c0_6, %c0_7], %8 {strides = array<i32>} : memref<8x128xf32, #tpu.memory_space<vmem>>, vector<8x128xf32>,
    %c0_i32_8 = arith.constant 0 : i32
    %10 = arith.cmpi eq, %arg1, %c0_i32_8 : i32
    %11 = arith.extui %10 : i1 to i32
    %c0_i32_9 = arith.constant 0 : i32
    %12 = arith.cmpi ne, %11, %c0_i32_9 : i32
    scf.if %12 {
      %c0_10 = arith.constant 0 : index
      %c0_11 = arith.constant 0 : index
      %13 = vector.load %arg8[%c0_10, %c0_11] : memref<8x128xf32, #tpu.memory_space<vmem>>, vector<8x128xf32>
      %14 = vector.extract_strided_slice %13 {offsets = [0, 0], sizes = [8, 8], strides = [1, 1]} : vector<8x128xf32> to vector<8x8xf32>
      %c0_12 = arith.constant 0 : index
      %c0_13 = arith.constant 0 : index
      %15 = vector.load %arg6[%c0_12, %c0_13] : memref<8x8xf32, #tpu.memory_space<vmem>>, vector<8x8xf32>
      tpu.vector_store %arg6[%c0_12, %c0_13], %14 {strides = array<i32>} : memref<8x8xf32, #tpu.memory_space<vmem>>, vector<8x8xf32>,
      %cst_14 = arith.constant dense<0xFF800000> : vector<8xf32>
      %16 = vector.multi_reduction <maximumf>, %13, %cst_14 [1] : vector<8x128xf32> to vector<8xf32>
      %17 = vector.shape_cast %16 : vector<8xf32> to vector<8x1xf32>
      %18 = vector.broadcast %17 : vector<8x1xf32> to vector<8x128xf32>
      %19 = arith.subf %13, %18 : vector<8x128xf32>
      %20 = math.exp %19 : vector<8x128xf32>
      %cst_15 = arith.constant dense<0.000000e+00> : vector<8xf32>
      %21 = vector.multi_reduction <add>, %20, %cst_15 [1] : vector<8x128xf32> to vector<8xf32>
      %22 = vector.shape_cast %21 : vector<8xf32> to vector<8x1xf32>
      %23 = math.log %22 : vector<8x1xf32>
      %24 = tpu.iota {dimensions = array<i32: 1>} : vector<8x128xi32>
      %c0_16 = arith.constant 0 : index
      %c0_17 = arith.constant 0 : index
      %25 = vector.load %arg5[%c0_16, %c0_17] : memref<8x1xi32, #tpu.memory_space<vmem>>, vector<8x1xi32>
      %26 = vector.broadcast %25 : vector<8x1xi32> to vector<8x128xi32>
      %27 = arith.cmpi eq, %24, %26 : vector<8x128xi32>
      %cst_18 = arith.constant 0.000000e+00 : f32
      %28 = vector.broadcast %cst_18 : f32 to vector<8x128xf32>
      %29 = arith.select %27, %19, %28 : vector<8x128xi1>, vector<8x128xf32>
      %cst_19 = arith.constant dense<0.000000e+00> : vector<8xf32>
      %30 = vector.multi_reduction <add>, %29, %cst_19 [1] : vector<8x128xf32> to vector<8xf32>
      %31 = vector.shape_cast %30 : vector<8xf32> to vector<8x1xf32>
      %32 = arith.subf %23, %31 : vector<8x1xf32>
      %c8_i32 = arith.constant 8 : i32
      %33 = arith.muli %arg0, %c8_i32 : i32
      %34 = tpu.iota {dimensions = array<i32: 0>} : vector<8x1xi32>
      %35 = vector.broadcast %33 : i32 to vector<8x1xi32>
      %36 = arith.addi %35, %34 : vector<8x1xi32>
      %c8_i32_20 = arith.constant 8 : i32
      %37 = vector.broadcast %c8_i32_20 : i32 to vector<8x1xi32>
      %38 = arith.cmpi slt, %36, %37 : vector<8x1xi32>
      %cst_21 = arith.constant 0.000000e+00 : f32
      %39 = vector.broadcast %cst_21 : f32 to vector<8x1xf32>
      %40 = arith.select %38, %32, %39 : vector<8x1xi1>, vector<8x1xf32>
      %41 = vector.shape_cast %40 : vector<8x1xf32> to vector<1x8x1xf32>
      %cst_22 = arith.constant dense<0.000000e+00> : vector<1xf32>
      %42 = vector.multi_reduction <add>, %41, %cst_22 [1, 2] : vector<1x8x1xf32> to vector<1xf32>
      %43 = vector.shape_cast %42 : vector<1xf32> to vector<1x1x1xf32>
      %44 = vector.extract %43[0, 0, 0] : f32 from vector<1x1x1xf32>
      %c0_23 = arith.constant 0 : index
      %c0_24 = arith.constant 0 : index
      %45 = memref.load %arg7[%c0_23, %c0_24] : memref<1x1xf32, #tpu.memory_space<smem>>
      memref.store %44, %arg7[%c0_23, %c0_24] : memref<1x1xf32, #tpu.memory_space<smem>>
    } else {
    }
    return
  }
  func.func @transform_0(%arg0: i32, %arg1: i32) -> (i32, i32) {
    %c0_i32 = arith.constant 0 : i32
    return %arg0, %arg1 : i32, i32
  }
  func.func @transform_1(%arg0: i32, %arg1: i32) -> (i32, i32) {
    %c0_i32 = arith.constant 0 : i32
    %c0_i32_0 = arith.constant 0 : i32
    return %arg1, %c0_i32 : i32, i32
  }
  func.func @transform_2(%arg0: i32, %arg1: i32) -> (i32, i32) {
    %c0_i32 = arith.constant 0 : i32
    %c0_i32_0 = arith.constant 0 : i32
    %c0_i32_1 = arith.constant 0 : i32
    return %c0_i32, %c0_i32_0 : i32, i32
  }
  func.func @transform_3(%arg0: i32, %arg1: i32) -> (i32, i32) {
    %c0_i32 = arith.constant 0 : i32
    %c0_i32_0 = arith.constant 0 : i32
    return %arg0, %c0_i32 : i32, i32
  }
  func.func @transform_4(%arg0: i32, %arg1: i32) -> (i32, i32) {
    %c0_i32 = arith.constant 0 : i32
    %c0_i32_0 = arith.constant 0 : i32
    return %arg0, %c0_i32 : i32, i32
  }
  func.func @transform_5(%arg0: i32, %arg1: i32) -> (i32, i32) {
    %c0_i32 = arith.constant 0 : i32
    %c0_i32_0 = arith.constant 0 : i32
    return %arg0, %c0_i32 : i32, i32
  }
}

</mosaic_0001>

<bundles_post_ra>
// kernel: tpu_custom_call.1
= control target key start
LH: loop header
LB: loop body
LE: loop exit
PB: predicated region body
PF: predicated region fallthrough
CT: control target
= control target key end

     0   :  { %11 = vsyncpa [#allocation4], 0  ;;  %s362_s0 = inlined_call_operand.vmem [shape: f32[8,32], index: 0, kind: input, shape index: {}]   ;;  %s363_s1 = inlined_call_operand.hbm [shape: bf16[32,128], index: 1, kind: input, shape index: {}]   ;;  %s364_s2 = inlined_call_operand.vmem [shape: f32[1,128], index: 2, kind: input, shape index: {}]   ;;  %s365_s3 = inlined_call_operand.vmem [shape: s32[8,1], index: 3, kind: input, shape index: {}]   ;;  %s366_s4 = inlined_call_operand.hbm [shape: f32[8,8], index: 4, kind: output, shape index: {0}]   ;;  %s367_s5 = inlined_call_operand.hbm [shape: f32[1,1], index: 5, kind: output, shape index: {1}]  }
   0x1   :  { %12 = vsyncpa [#allocation5], 0 }
   0x2   :  { %13 = vsyncpa [#allocation6], 0  ;;  %s279_s18 = smov [#allocation3]   ;;  %s219_s22 = scalar_lea.hbm %s363_s1, 256 }
   0x3   :  { %s21_s19 = sshll.u32 %s279_s18, 4  ;;  %p220_p0 = scmp.ne.s32.totalorder %s363_s1, %s219_s22  ;;  %s22_s19 = int_to_ptr.vmem [resolvable:$true] %s21_s19 }
   0x4   :  { %p223_p1 = scmp.lt.u32.totalorder %s219_s22, %s363_s1 }
   0x6   :  { %p225_p2 = pnand %p223_p1, %p220_p0 }
   0x8   :  { %228 = shalt.err (!%p225_p2)
}
   0x9   :  { %s229_s27 = scalar_lea.vmem %s22_s19, 256  ;;  %p234_p4 = scmp.lt.s32.totalorder %s22_s19, %s22_s19 }
   0xa   :  { %p230_p3 = scmp.ne.s32.totalorder %s22_s19, %s229_s27  ;;  %p235_p5 = scmp.lt.s32.totalorder %s229_s27, %s229_s27 }
   0xc   :  { %p236_p6 = por %p235_p5, %p234_p4 }
   0xe   :  { %p237_p7 = pnand %p236_p6, %p230_p3 }
  0x10   :  { %240 = shalt.err (!%p237_p7)
}
  0x11   :  { %s280_s28 = smov 64   ;;  %s281_s29 = smov 4  }
  0x12   :  { %27 = dma.hbm_to_vmem [thread:$0]  %s363_s1, 256, %s22_s19, [#allocation4], %s280_s28, %s280_s28, %s281_s29  }
  0x13   :  { %273 = dma.done.wait [#allocation4], 256  }
  0x14   :  { %274 = vsyncadd [#allocation4], 4294967040  ;;  %v282_v0 = vmov 0.0   ;;  %vm283_vm0 = vmmov 0   ;;  %v213_v1 = vld [vmem:[#allocation3] sm:$0xff]   ;;  %v214_v2 = vld [vmem:[#allocation3 + $0x8] sm:$0xff]   ;;  %v128_v16 = vlaneseq }
  0x15   :  { %194 = vmatprep.subr.bf16.mxu0 %v282_v0  ;;  %198 = vmatprep.mubr.msk.bf16.mxu0 %vm283_vm0, %v282_v0  ;;  %v48_v3 = vld [vmem:[%s362_s0] sm:$0xff]  ;;  %vm67_vm1 = vcmask 261120   ;;  %v284_v5 = vmov 0   ;;  %vm117_vm2 = vcmask 64512   ;;  %vm146_vm4 = vcmask 7168  }
  0x16   :  { %195 = vmatpush3.bf16.msra.mxu0 %v213_v1  ;;  %v54_v4 = vpack.c.bf16 %v48_v3, %v48_v3  ;;  %212 = vset.pattern.permute.xlu0 %v284_v5  ;;  %v187_v6 = vld [vmem:[%s364_s2] ss:$0 sm:$0xff]  ;;  %v129_v17 = vand.u32 127, %v128_v16  ;;  %s285_s2 = smov [#allocation7]  }
  0x17   :  { %196 = vmatprep.subr.bf16.mxu0 %v282_v0  ;;  %v130_v12 = vld [vmem:[%s365_s3] sm:$0xff]  ;;  %s165_s3 = sshll.u32 %s285_s2, 4  ;;  %s166_s3 = int_to_ptr.vmem [resolvable:$true] %s165_s3 }
  0x18   :  { %s241_s11 = scalar_lea.vmem %s166_s3, 128  ;;  %p246_p9 = scmp.lt.s32.totalorder %s166_s3, %s166_s3 }
  0x19   :  { %p242_p8 = scmp.ne.s32.totalorder %s166_s3, %s241_s11  ;;  %p247_p10 = scmp.lt.s32.totalorder %s241_s11, %s241_s11 }
  0x1a   :  { %197 = vmatpush3.bf16.msra.mxu0 %v214_v2 }
  0x1b   :  { %p248_p11 = por %p247_p10, %p246_p9 }
  0x1d   :  { %199 = vmatmul.mubr.msk.bf16.vlgmr.msra.gmra.mrb[0].mxu0 %vm67_vm1, %v54_v4  ;;  %p249_p12 = pnand %p248_p11, %p242_p8 }
  0xf0   :  { %v105_v7 = vpop.f32.mrb[0].mxu0 }
  0xf1   :  { %v111_v8 = vadd.f32 %v187_v6, %v105_v7  ;;  %v200_v9 = vpop.f32.mrb[1].mxu0 }
  0xf2   :  { %v108_v10 = vpop.f32.mrb[2].mxu0 }
  0xf3   :  { %v201_v11 = vpop.f32.mrb[3].mxu0  ;;  %119 = vmax.xlane.f32.xlu0 %v111_v8  ;;  %118 = vst.msk [vmem:[#allocation7] sm:$0xff] %vm117_vm2, %v111_v8 }
 0x109   :  { %132 = vperm.xlu0 %212, %v130_v12  }
 0x180   :  { %v120_v13 = vpop.xlane.xlu0 %119 }
 0x181   :  { %v121_v14 = vsub.f32 %v111_v8, %v120_v13 }
 0x183   :  { %v122_v15 = vmul.f32 1.442695, %v121_v14 }
 0x185   :  { %215 = vpow2.f32 %v122_v15 }
 0x188   :  { %v133_v18 = vpop.permute.xlu0 %132 }
 0x189   :  { %vm134_vm3 = vcmp.eq.s32.totalorder %v129_v17, %v133_v18 }
 0x18a   :  { %v135_v20 = vsel %vm134_vm3, %v121_v14, 0.0 }
 0x18f   :  { %v216_v19 = vpop.eup %215 }
 0x190   :  { %124 = vadd.xlane.f32.xlu1 %v216_v19 }
 0x194   :  { %136 = vadd.xlane.f32.xlu1 %v135_v20 }
 0x21d   :  { %v125_v21 = vpop.xlane.xlu1 %124 }
 0x21e   :  { %217 = vlog2.f32 %v125_v21 }
 0x221   :  { %v137_v24 = vpop.xlane.xlu1 %136 }
 0x228   :  { %v218_v22 = vpop.eup %217 }
 0x229   :  { %v127_v23 = vmul.f32 0.6931472, %v218_v22 }
 0x22b   :  { %v138_v25 = vsub.f32 %v127_v23, %v137_v24 }
 0x22d   :  { %v147_v26 = vsel %vm146_vm4, %v138_v25, 0.0 }
 0x22e   :  { %148 = vadd.xlane.f32.xlu1 %v147_v26 }
 0x22f   :  { %252 = shalt.err (!%p249_p12)
}
 0x230   :  { %s253_s14 = scalar_lea.hbm %s366_s4, 128 }
 0x231   :  { %p254_p13 = scmp.ne.s32.totalorder %s366_s4, %s253_s14  ;;  %p257_p0 = scmp.lt.u32.totalorder %s253_s14, %s366_s4 }
 0x233   :  { %p259_p1 = pnand %p257_p0, %p254_p13 }
 0x235   :  { %262 = shalt.err (!%p259_p1)
}
 0x236   :  { %168 = dma.vmem_to_hbm [thread:$0]  %s166_s3, 128, %s366_s4, [#allocation5]  }
 0x237   :  { %s263_s24 = scalar_lea.hbm %s367_s5, 16 }
 0x238   :  { %p264_p2 = scmp.ne.s32.totalorder %s367_s5, %s263_s24  ;;  %p267_p3 = scmp.lt.u32.totalorder %s263_s24, %s367_s5 }
 0x23a   :  { %p269_p4 = pnand %p267_p3, %p264_p2 }
 0x2bb   :  { %v149_v27 = vpop.xlane.xlu1 %148 }
 0x2bc   :  { %v150_v28 = vrot.slane %v149_v27, 4 }
 0x2be   :  { %v151_v29 = vadd.f32 %v150_v28, %v149_v27 }
 0x2c0   :  { %v152_v30 = vrot.slane %v151_v29, 2 }
 0x2c2   :  { %v153_v31 = vadd.f32 %v152_v30, %v151_v29 }
 0x2c4   :  { %v154_v32 = vrot.slane %v153_v31, 1 }
 0x2c6   :  { %v155_v33 = vadd.f32 %v154_v32, %v153_v31 }
 0x2c8   :  { %202 = vpush %v155_v33 }
 0x2f9   :  { %s203_s21 = spop %202 }
 0x2fa   :  { %158 = sst [smem:[#allocation8]] %s203_s21 }
 0x2fb   :  { %272 = shalt.err (!%p269_p4)
}
 0x2fc   :  { %s286_s28 = smov [#allocation8]  }
 0x2fd   :  { %176 = dma.smem_to_hbm %s286_s28, 16, %s367_s5, [#allocation6]  }
 0x2fe   :  { %275 = dma.done.wait [#allocation5], 128  }
 0x2ff   :  { %276 = vsyncadd [#allocation5], 4294967168 }
 0x300   :  { %277 = dma.done.wait [#allocation6], 16  }
 0x301   :  { %278 = vsyncadd [#allocation6], 4294967280 }
 0x302   :  { %183 = sfence }
 0x303   :  { %184 = vsyncpa [#allocation4], 1 }
 0x304   :  { %185 = vsyncpa [#allocation5], 1 }
 0x305   :  { %186 = vsyncpa [#allocation6], 1 }

</bundles_post_ra>
